<compile_context>
chip_gen: v7x
topology: tpu7x:2x2x1
jax: 0.10.0
libtpu: 0.0.40
codegen_flags: <defaults>
</compile_context>

<pallas_src>
import functools

import jax
import jax.numpy as jnp
from jax.experimental import pallas as pl
from jax.experimental.pallas import tpu as pltpu

LANE = 128                      # vreg lane width
SUBLANE = 8                     # f32 sublane count
TILE_B_MAX = 2048               # batch rows per grid step (~10-15 MiB VMEM footprint)
VMEM_LIMIT_BYTES = 32 * 1024 * 1024   # explicit: > v5e 16 MiB default, < v7x 64 MiB phys


def _round_up(n, m):
    return ((n + m - 1) // m) * m


def _softplus(x):
    # numerically stable softplus: max(x,0) + log1p(exp(-|x|))
    return jnp.maximum(x, 0.0) + jnp.log1p(jnp.exp(-jnp.abs(x)))


def _policy_kernel(x_ref,
                   w1_ref, b1_ref,
                   w2_ref, b2_ref,
                   w3_ref, b3_ref,
                   wh_ref, bh_ref,
                   out_ref, *, a_pad):
    """One batch tile.  Weights bf16, biases f32, accumulation f32.

    out_ref holds the fused [mu | std] slab, split on a 128-lane boundary.
    """
    # bf16 cast happens in-kernel: no wrapper-side pad/cast HBM pass.
    x = x_ref[...].astype(jnp.bfloat16)

    h = jnp.dot(x, w1_ref[...], preferred_element_type=jnp.float32) + b1_ref[...]
    h = jnp.maximum(h, 0.0).astype(jnp.bfloat16)

    h = jnp.dot(h, w2_ref[...], preferred_element_type=jnp.float32) + b2_ref[...]
    h = jnp.maximum(h, 0.0).astype(jnp.bfloat16)

    h = jnp.dot(h, w3_ref[...], preferred_element_type=jnp.float32) + b3_ref[...]
    h = jnp.maximum(h, 0.0).astype(jnp.bfloat16)

    # Fused mu|std head: single MXU pass into (tile_b, 2*a_pad) f32.
    head = jnp.dot(h, wh_ref[...], preferred_element_type=jnp.float32) + bh_ref[...]

    # Two 128-lane-aligned, unmasked stores into the fused output slab.
    out_ref[:, :a_pad] = jnp.tanh(head[:, :a_pad]).astype(out_ref.dtype)
    out_ref[:, a_pad:] = (_softplus(head[:, a_pad:]) + 1e-8).astype(out_ref.dtype)


def init_params(key, state_dim, hidden_dim, action_dim):
    """Deterministic synthetic init (PyTorch-Linear-like uniform ranges)."""
    def linear(k, fan_in, fan_out):
        k1, k2 = jax.random.split(k)
        bound = 1.0 / jnp.sqrt(fan_in)
        w = jax.random.uniform(k1, (fan_in, fan_out), jnp.float32, -bound, bound)
        b = jax.random.uniform(k2, (1, fan_out), jnp.float32, -bound, bound)
        return w, b

    ks = jax.random.split(key, 5)
    w1, b1 = linear(ks[0], state_dim, hidden_dim)
    w2, b2 = linear(ks[1], hidden_dim, hidden_dim)
    w3, b3 = linear(ks[2], hidden_dim, hidden_dim)
    wmu, bmu = linear(ks[3], hidden_dim, action_dim)
    wstd, bstd = linear(ks[4], hidden_dim, action_dim)
    return dict(w1=w1, b1=b1, w2=w2, b2=b2, w3=w3, b3=b3,
                wmu=wmu, bmu=bmu, wstd=wstd, bstd=bstd)


def make_padded_params(params):
    """Pad output dims to 128-lane multiples, fuse mu|std head, bf16 weights.

    w1 keeps its true input dim (state_dim) so x never needs feature padding.
    """
    def pad_w(w, pad_in):
        i, o = w.shape
        ip = _round_up(i, LANE) if pad_in else i
        wp = jnp.zeros((ip, _round_up(o, LANE)), jnp.float32)
        return wp.at[:i, :o].set(w).astype(jnp.bfloat16)

    def pad_b(b):
        b = b.reshape(1, -1)
        o = b.shape[1]
        bp = jnp.zeros((1, _round_up(o, LANE)), jnp.float32)
        return bp.at[:, :o].set(b)

    action_dim = params["wmu"].shape[1]
    a_pad = _round_up(action_dim, LANE)

    w_head = jnp.concatenate(
        [pad_w(params["wmu"], True), pad_w(params["wstd"], True)], axis=1)
    b_head = jnp.concatenate([pad_b(params["bmu"]), pad_b(params["bstd"])], axis=1)

    return dict(
        w1=pad_w(params["w1"], False), b1=pad_b(params["b1"]),
        w2=pad_w(params["w2"], True), b2=pad_b(params["b2"]),
        w3=pad_w(params["w3"], True), b3=pad_b(params["b3"]),
        w_head=w_head, b_head=b_head,
        state_dim=params["w1"].shape[0],
        action_dim=action_dim,
        a_pad=a_pad,
    )


def policy_net_forward_fused(x, pp, out_dtype=jnp.bfloat16):
    """x: (B, state_dim) float32.  Returns fused padded [mu | std] slab
    of shape (b_pad, 2*a_pad) in out_dtype (mu in lanes [:a_pad], std in [a_pad:])."""
    B, state_dim = x.shape
    assert state_dim == pp["state_dim"]
    a_pad = pp["a_pad"]

    # Minimal batch padding: <= ~8 wasted rows per tile (not round_up(B, tile_b)).
    n_tiles = max(1, -(-B // TILE_B_MAX))
    tile_b = _round_up(-(-B // n_tiles), SUBLANE)
    b_pad = n_tiles * tile_b
    if b_pad != B:
        x = jnp.pad(x, ((0, b_pad - B), (0, 0)))

    def resident(shape):                  # weights/biases: VMEM-resident across grid
        return pl.BlockSpec(shape, lambda i: (0, 0))

    kernel = functools.partial(_policy_kernel, a_pad=a_pad)

    out = pl.pallas_call(
        kernel,
        grid=(n_tiles,),
        in_specs=[
            # x streams per batch tile; last dim == full array dim (no 128 pad needed)
            pl.BlockSpec((tile_b, state_dim), lambda i: (i, 0)),
            resident(pp["w1"].shape), resident(pp["b1"].shape),
            resident(pp["w2"].shape), resident(pp["b2"].shape),
            resident(pp["w3"].shape), resident(pp["b3"].shape),
            resident(pp["w_head"].shape), resident(pp["b_head"].shape),
        ],
        out_specs=pl.BlockSpec((tile_b, 2 * a_pad), lambda i: (i, 0)),
        out_shape=jax.ShapeDtypeStruct((b_pad, 2 * a_pad), out_dtype),
        compiler_params=pltpu.CompilerParams(
            dimension_semantics=("parallel",),          # shards batch tiles across TCs on v7x
            vmem_limit_bytes=VMEM_LIMIT_BYTES),
    )(x, pp["w1"], pp["b1"], pp["w2"], pp["b2"], pp["w3"], pp["b3"],
      pp["w_head"], pp["b_head"])
    return out


def policy_net_forward(x, pp, out_dtype=jnp.bfloat16):
    """Drop-in (mu, std) API matching the PyTorch module (slices the fused slab).
    Prefer policy_net_forward_fused downstream to avoid the extra slice copies."""
    B = x.shape[0]
    a_pad = pp["a_pad"]
    ad = pp["action_dim"]
    out = policy_net_forward_fused(x, pp, out_dtype=out_dtype)
    return out[:B, :ad], out[:B, a_pad:a_pad + ad]


if __name__ == "__main__":
    state_dim, hidden_dim, action_dim, batch = 16, 32, 8, 8

    key = jax.random.PRNGKey(0)
    kx, kp = jax.random.split(key)
    x = jax.random.normal(kx, (batch, state_dim), jnp.float32)
    params = init_params(kp, state_dim, hidden_dim, action_dim)
    padded = make_padded_params(params)

    mu, std = policy_net_forward(x, padded)
    jax.block_until_ready((mu, std))

    # f32 reference (PyTorch semantics).  Kernel matmuls run in bf16 and outputs
    # are stored in bf16, so use a correspondingly loose tolerance.
    def ref(x, p):
        h = jax.nn.relu(x @ p["w1"] + p["b1"])
        h = jax.nn.relu(h @ p["w2"] + p["b2"])
        h = jax.nn.relu(h @ p["w3"] + p["b3"])
        return (jnp.tanh(h @ p["wmu"] + p["bmu"]),
                jax.nn.softplus(h @ p["wstd"] + p["bstd"]) + 1e-8)

    mu_ref, std_ref = ref(x, params)
    assert mu.shape == (batch, action_dim) and std.shape == (batch, action_dim)
    assert jnp.allclose(mu.astype(jnp.float32), mu_ref, atol=3e-2, rtol=3e-2), "mu mismatch"
    assert jnp.allclose(std.astype(jnp.float32), std_ref, atol=3e-2, rtol=3e-2), "std mismatch"

    print("KERNEL_OK")
</pallas_src>

<mosaic_0001>
module attributes {stable_mosaic.version = 11 : i64} {
  func.func @_policy_kernel(%arg0: i32, %arg1: memref<8x16xf32, #tpu.memory_space<vmem>>, %arg2: memref<16x128xbf16, #tpu.memory_space<vmem>>, %arg3: memref<1x128xf32, #tpu.memory_space<vmem>>, %arg4: memref<128x128xbf16, #tpu.memory_space<vmem>>, %arg5: memref<1x128xf32, #tpu.memory_space<vmem>>, %arg6: memref<128x128xbf16, #tpu.memory_space<vmem>>, %arg7: memref<1x128xf32, #tpu.memory_space<vmem>>, %arg8: memref<128x256xbf16, #tpu.memory_space<vmem>>, %arg9: memref<1x256xf32, #tpu.memory_space<vmem>>, %arg10: memref<8x256xbf16, #tpu.memory_space<vmem>>) attributes {dimension_semantics = [#tpu.dimension_semantics<parallel>], iteration_bounds = array<i64: 1>, scalar_prefetch = 0 : i64, scratch_operands = 0 : i64, tpu.core_type = #tpu.core_type<tc>, window_params = [{transform_indices = @transform_0, window_bounds = array<i64: 8, 16>}, {pipeline_mode = #tpu.pipeline_mode<synchronous>, transform_indices = @transform_1, window_bounds = array<i64: 16, 128>}, {pipeline_mode = #tpu.pipeline_mode<synchronous>, transform_indices = @transform_2, window_bounds = array<i64: 1, 128>}, {pipeline_mode = #tpu.pipeline_mode<synchronous>, transform_indices = @transform_3, window_bounds = array<i64: 128, 128>}, {pipeline_mode = #tpu.pipeline_mode<synchronous>, transform_indices = @transform_4, window_bounds = array<i64: 1, 128>}, {pipeline_mode = #tpu.pipeline_mode<synchronous>, transform_indices = @transform_5, window_bounds = array<i64: 128, 128>}, {pipeline_mode = #tpu.pipeline_mode<synchronous>, transform_indices = @transform_6, window_bounds = array<i64: 1, 128>}, {pipeline_mode = #tpu.pipeline_mode<synchronous>, transform_indices = @transform_7, window_bounds = array<i64: 128, 256>}, {pipeline_mode = #tpu.pipeline_mode<synchronous>, transform_indices = @transform_8, window_bounds = array<i64: 1, 256>}, {transform_indices = @transform_9, window_bounds = array<i64: 8, 256>}]} {
    %c0 = arith.constant 0 : index
    %c0_0 = arith.constant 0 : index
    %0 = vector.load %arg1[%c0, %c0_0] : memref<8x16xf32, #tpu.memory_space<vmem>>, vector<8x16xf32>
    %1 = arith.truncf %0 : vector<8x16xf32> to vector<8x16xbf16>
    %c0_1 = arith.constant 0 : index
    %c0_2 = arith.constant 0 : index
    %2 = vector.load %arg2[%c0_1, %c0_2] : memref<16x128xbf16, #tpu.memory_space<vmem>>, vector<16x128xbf16>
    %cst = arith.constant dense<0.000000e+00> : vector<8x128xf32>
    %3 = tpu.matmul %1, %2, %cst {dimension_numbers = #tpu.dot_dimension_numbers<[1], [0], [0], [1], [0, 0, 1, 1], [], []>} : vector<8x16xbf16>, vector<16x128xbf16>, vector<8x128xf32> -> vector<8x128xf32>
    %c0_3 = arith.constant 0 : index
    %c0_4 = arith.constant 0 : index
    %4 = vector.load %arg3[%c0_3, %c0_4] : memref<1x128xf32, #tpu.memory_space<vmem>>, vector<1x128xf32>
    %5 = vector.broadcast %4 : vector<1x128xf32> to vector<8x128xf32>
    %6 = arith.addf %3, %5 : vector<8x128xf32>
    %cst_5 = arith.constant 0.000000e+00 : f32
    %7 = vector.broadcast %cst_5 : f32 to vector<8x128xf32>
    %8 = arith.maximumf %6, %7 : vector<8x128xf32>
    %9 = arith.truncf %8 : vector<8x128xf32> to vector<8x128xbf16>
    %c0_6 = arith.constant 0 : index
    %c0_7 = arith.constant 0 : index
    %10 = vector.load %arg4[%c0_6, %c0_7] : memref<128x128xbf16, #tpu.memory_space<vmem>>, vector<128x128xbf16>
    %cst_8 = arith.constant dense<0.000000e+00> : vector<8x128xf32>
    %11 = tpu.matmul %9, %10, %cst_8 {dimension_numbers = #tpu.dot_dimension_numbers<[1], [0], [0], [1], [0, 0, 1, 1], [], []>} : vector<8x128xbf16>, vector<128x128xbf16>, vector<8x128xf32> -> vector<8x128xf32>
    %c0_9 = arith.constant 0 : index
    %c0_10 = arith.constant 0 : index
    %12 = vector.load %arg5[%c0_9, %c0_10] : memref<1x128xf32, #tpu.memory_space<vmem>>, vector<1x128xf32>
    %13 = vector.broadcast %12 : vector<1x128xf32> to vector<8x128xf32>
    %14 = arith.addf %11, %13 : vector<8x128xf32>
    %cst_11 = arith.constant 0.000000e+00 : f32
    %15 = vector.broadcast %cst_11 : f32 to vector<8x128xf32>
    %16 = arith.maximumf %14, %15 : vector<8x128xf32>
    %17 = arith.truncf %16 : vector<8x128xf32> to vector<8x128xbf16>
    %c0_12 = arith.constant 0 : index
    %c0_13 = arith.constant 0 : index
    %18 = vector.load %arg6[%c0_12, %c0_13] : memref<128x128xbf16, #tpu.memory_space<vmem>>, vector<128x128xbf16>
    %cst_14 = arith.constant dense<0.000000e+00> : vector<8x128xf32>
    %19 = tpu.matmul %17, %18, %cst_14 {dimension_numbers = #tpu.dot_dimension_numbers<[1], [0], [0], [1], [0, 0, 1, 1], [], []>} : vector<8x128xbf16>, vector<128x128xbf16>, vector<8x128xf32> -> vector<8x128xf32>
    %c0_15 = arith.constant 0 : index
    %c0_16 = arith.constant 0 : index
    %20 = vector.load %arg7[%c0_15, %c0_16] : memref<1x128xf32, #tpu.memory_space<vmem>>, vector<1x128xf32>
    %21 = vector.broadcast %20 : vector<1x128xf32> to vector<8x128xf32>
    %22 = arith.addf %19, %21 : vector<8x128xf32>
    %cst_17 = arith.constant 0.000000e+00 : f32
    %23 = vector.broadcast %cst_17 : f32 to vector<8x128xf32>
    %24 = arith.maximumf %22, %23 : vector<8x128xf32>
    %25 = arith.truncf %24 : vector<8x128xf32> to vector<8x128xbf16>
    %c0_18 = arith.constant 0 : index
    %c0_19 = arith.constant 0 : index
    %26 = vector.load %arg8[%c0_18, %c0_19] : memref<128x256xbf16, #tpu.memory_space<vmem>>, vector<128x256xbf16>
    %cst_20 = arith.constant dense<0.000000e+00> : vector<8x256xf32>
    %27 = tpu.matmul %25, %26, %cst_20 {dimension_numbers = #tpu.dot_dimension_numbers<[1], [0], [0], [1], [0, 0, 1, 1], [], []>} : vector<8x128xbf16>, vector<128x256xbf16>, vector<8x256xf32> -> vector<8x256xf32>
    %c0_21 = arith.constant 0 : index
    %c0_22 = arith.constant 0 : index
    %28 = vector.load %arg9[%c0_21, %c0_22] : memref<1x256xf32, #tpu.memory_space<vmem>>, vector<1x256xf32>
    %29 = vector.broadcast %28 : vector<1x256xf32> to vector<8x256xf32>
    %30 = arith.addf %27, %29 : vector<8x256xf32>
    %31 = vector.extract_strided_slice %30 {offsets = [0, 0], sizes = [8, 128], strides = [1, 1]} : vector<8x256xf32> to vector<8x128xf32>
    %32 = math.tanh %31 : vector<8x128xf32>
    %33 = arith.truncf %32 : vector<8x128xf32> to vector<8x128xbf16>
    %c0_23 = arith.constant 0 : index
    %c0_24 = arith.constant 0 : index
    %34 = vector.load %arg10[%c0_23, %c0_24] : memref<8x256xbf16, #tpu.memory_space<vmem>>, vector<8x128xbf16>
    tpu.vector_store %arg10[%c0_23, %c0_24], %33 {strides = array<i32>} : memref<8x256xbf16, #tpu.memory_space<vmem>>, vector<8x128xbf16>,
    %35 = vector.extract_strided_slice %30 {offsets = [0, 128], sizes = [8, 128], strides = [1, 1]} : vector<8x256xf32> to vector<8x128xf32>
    %cst_25 = arith.constant 0.000000e+00 : f32
    %36 = vector.broadcast %cst_25 : f32 to vector<8x128xf32>
    %37 = arith.maximumf %35, %36 : vector<8x128xf32>
    %38 = math.absf %35 : vector<8x128xf32>
    %cst_26 = arith.constant 0.000000e+00 : f32
    %39 = vector.broadcast %cst_26 : f32 to vector<8x128xf32>
    %40 = arith.subf %39, %38 : vector<8x128xf32>
    %41 = math.exp %40 : vector<8x128xf32>
    %42 = math.log1p %41 : vector<8x128xf32>
    %43 = arith.addf %37, %42 : vector<8x128xf32>
    %cst_27 = arith.constant 9.99999993E-9 : f32
    %44 = vector.broadcast %cst_27 : f32 to vector<8x128xf32>
    %45 = arith.addf %43, %44 : vector<8x128xf32>
    %46 = arith.truncf %45 : vector<8x128xf32> to vector<8x128xbf16>
    %c0_28 = arith.constant 0 : index
    %c128 = arith.constant 128 : index
    %47 = vector.load %arg10[%c0_28, %c128] : memref<8x256xbf16, #tpu.memory_space<vmem>>, vector<8x128xbf16>
    tpu.vector_store %arg10[%c0_28, %c128], %46 {strides = array<i32>} : memref<8x256xbf16, #tpu.memory_space<vmem>>, vector<8x128xbf16>,
    return
  }
  func.func @transform_0(%arg0: i32) -> (i32, i32) {
    %c0_i32 = arith.constant 0 : i32
    %c0_i32_0 = arith.constant 0 : i32
    return %arg0, %c0_i32 : i32, i32
  }
  func.func @transform_1(%arg0: i32) -> (i32, i32) {
    %c0_i32 = arith.constant 0 : i32
    %c0_i32_0 = arith.constant 0 : i32
    %c0_i32_1 = arith.constant 0 : i32
    return %c0_i32, %c0_i32_0 : i32, i32
  }
  func.func @transform_2(%arg0: i32) -> (i32, i32) {
    %c0_i32 = arith.constant 0 : i32
    %c0_i32_0 = arith.constant 0 : i32
    %c0_i32_1 = arith.constant 0 : i32
    return %c0_i32, %c0_i32_0 : i32, i32
  }
  func.func @transform_3(%arg0: i32) -> (i32, i32) {
    %c0_i32 = arith.constant 0 : i32
    %c0_i32_0 = arith.constant 0 : i32
    %c0_i32_1 = arith.constant 0 : i32
    return %c0_i32, %c0_i32_0 : i32, i32
  }
  func.func @transform_4(%arg0: i32) -> (i32, i32) {
    %c0_i32 = arith.constant 0 : i32
    %c0_i32_0 = arith.constant 0 : i32
    %c0_i32_1 = arith.constant 0 : i32
    return %c0_i32, %c0_i32_0 : i32, i32
  }
  func.func @transform_5(%arg0: i32) -> (i32, i32) {
    %c0_i32 = arith.constant 0 : i32
    %c0_i32_0 = arith.constant 0 : i32
    %c0_i32_1 = arith.constant 0 : i32
    return %c0_i32, %c0_i32_0 : i32, i32
  }
  func.func @transform_6(%arg0: i32) -> (i32, i32) {
    %c0_i32 = arith.constant 0 : i32
    %c0_i32_0 = arith.constant 0 : i32
    %c0_i32_1 = arith.constant 0 : i32
    return %c0_i32, %c0_i32_0 : i32, i32
  }
  func.func @transform_7(%arg0: i32) -> (i32, i32) {
    %c0_i32 = arith.constant 0 : i32
    %c0_i32_0 = arith.constant 0 : i32
    %c0_i32_1 = arith.constant 0 : i32
    return %c0_i32, %c0_i32_0 : i32, i32
  }
  func.func @transform_8(%arg0: i32) -> (i32, i32) {
    %c0_i32 = arith.constant 0 : i32
    %c0_i32_0 = arith.constant 0 : i32
    %c0_i32_1 = arith.constant 0 : i32
    return %c0_i32, %c0_i32_0 : i32, i32
  }
  func.func @transform_9(%arg0: i32) -> (i32, i32) {
    %c0_i32 = arith.constant 0 : i32
    %c0_i32_0 = arith.constant 0 : i32
    return %arg0, %c0_i32 : i32, i32
  }
}

</mosaic_0001>

<bundles_post_ra>
// kernel: tpu_custom_call.1
= control target key start
LH: loop header
LB: loop body
LE: loop exit
PB: predicated region body
PF: predicated region fallthrough
CT: control target
= control target key end

     0   :  { %14 = vsyncpa [#allocation3], 0  ;;  %s1055_s0 = inlined_call_operand.hbm [shape: f32[8,16], index: 0, kind: input, shape index: {}]   ;;  %s1056_s1 = inlined_call_operand.hbm [shape: bf16[16,128], index: 1, kind: input, shape index: {}]   ;;  %s1057_s2 = inlined_call_operand.vmem [shape: f32[1,128], index: 2, kind: input, shape index: {}]   ;;  %s1058_s3 = inlined_call_operand.hbm [shape: bf16[128,128], index: 3, kind: input, shape index: {}]   ;;  %s1059_s4 = inlined_call_operand.vmem [shape: f32[1,128], index: 4, kind: input, shape index: {}]   ;;  %s1060_s5 = inlined_call_operand.hbm [shape: bf16[128,128], index: 5, kind: input, shape index: {}]   ;;  %s1061_s6 = inlined_call_operand.vmem [shape: f32[1,128], index: 6, kind: input, shape index: {}]   ;;  %s1062_s7 = inlined_call_operand.hbm [shape: bf16[128,256], index: 7, kind: input, shape index: {}]   ;;  %s1063_s8 = inlined_call_operand.vmem [shape: f32[1,256], index: 8, kind: input, shape index: {}]   ;;  %s1064_s9 = inlined_call_operand.hbm [shape: bf16[8,256], index: 9, kind: output, shape index: {}]  }
   0x1   :  { %15 = vsyncpa [#allocation6], 0 }
   0x2   :  { %16 = vsyncpa [#allocation9], 0 }
   0x3   :  { %17 = vsyncpa [#allocation4], 0  ;;  %s879_s30 = smov [#allocation5]   ;;  %s739_s13 = scalar_lea.hbm %s1056_s1, 128 }
   0x4   :  { %s33_s10 = sshll.u32 %s879_s30, 4  ;;  %p740_p0 = scmp.ne.s32.totalorder %s1056_s1, %s739_s13  ;;  %s34_s10 = int_to_ptr.vmem [resolvable:$true] %s33_s10 }
   0x5   :  { %p743_p1 = scmp.lt.u32.totalorder %s739_s13, %s1056_s1 }
   0x7   :  { %p745_p2 = pnand %p743_p1, %p740_p0 }
   0x9   :  { %748 = shalt.err (!%p745_p2)
}
   0xa   :  { %s749_s18 = scalar_lea.vmem %s34_s10, 128  ;;  %p754_p4 = scmp.lt.s32.totalorder %s34_s10, %s34_s10 }
   0xb   :  { %p750_p3 = scmp.ne.s32.totalorder %s34_s10, %s749_s18  ;;  %p755_p5 = scmp.lt.s32.totalorder %s749_s18, %s749_s18 }
   0xd   :  { %p756_p6 = por %p755_p5, %p754_p4 }
   0xf   :  { %p757_p7 = pnand %p756_p6, %p750_p3 }
  0x11   :  { %760 = shalt.err (!%p757_p7)
}
  0x12   :  { %s880_s19 = smov 64   ;;  %s881_s20 = smov 4  }
  0x13   :  { %39 = dma.hbm_to_vmem [thread:$0]  %s1056_s1, 128, %s34_s10, [#allocation6], %s880_s19, %s880_s19, %s881_s20  }
  0x14   :  { %s882_s23 = smov [#allocation8]   ;;  %s883_s25 = smov [#allocation2]  }
  0x15   :  { %s61_s24 = sshll.u32 %s882_s23, 4  ;;  %s24_s26 = sshll.u32 %s883_s25, 4  ;;  %s62_s24 = int_to_ptr.vmem [resolvable:$true] %s61_s24  ;;  %s25_s26 = int_to_ptr.vmem [resolvable:$true] %s24_s26 }
  0x16   :  { %s761_s29 = scalar_lea.hbm %s1060_s5, 1024 }
  0x17   :  { %p762_p8 = scmp.ne.s32.totalorder %s1060_s5, %s761_s29  ;;  %p765_p9 = scmp.lt.u32.totalorder %s761_s29, %s1060_s5 }
  0x19   :  { %p767_p10 = pnand %p765_p9, %p762_p8 }
  0x1b   :  { %770 = shalt.err (!%p767_p10)
}
  0x1c   :  { %s771_s1 = scalar_lea.vmem %s62_s24, 1024  ;;  %p776_p12 = scmp.lt.s32.totalorder %s62_s24, %s62_s24 }
  0x1d   :  { %p772_p11 = scmp.ne.s32.totalorder %s62_s24, %s771_s1  ;;  %p777_p13 = scmp.lt.s32.totalorder %s771_s1, %s771_s1 }
  0x1f   :  { %p778_p0 = por %p777_p13, %p776_p12 }
  0x21   :  { %p779_p1 = pnand %p778_p0, %p772_p11 }
  0x23   :  { %782 = shalt.err (!%p779_p1)
}
  0x24   :  { %67 = dma.hbm_to_vmem [thread:$0]  %s1060_s5, 1024, %s62_s24, [#allocation9], %s880_s19, %s880_s19, %s881_s20  }
  0x25   :  { %s783_s17 = scalar_lea.hbm %s1055_s0, 128 }
  0x26   :  { %p784_p2 = scmp.ne.s32.totalorder %s1055_s0, %s783_s17  ;;  %p787_p3 = scmp.lt.u32.totalorder %s783_s17, %s1055_s0 }
  0x28   :  { %p789_p4 = pnand %p787_p3, %p784_p2 }
  0x2a   :  { %792 = shalt.err (!%p789_p4)
}
  0x2b   :  { %s793_s25 = scalar_lea.vmem %s25_s26, 128  ;;  %p798_p6 = scmp.lt.s32.totalorder %s25_s26, %s25_s26 }
  0x2c   :  { %p794_p5 = scmp.ne.s32.totalorder %s25_s26, %s793_s25  ;;  %p799_p7 = scmp.lt.s32.totalorder %s793_s25, %s793_s25 }
  0x2e   :  { %p800_p8 = por %p799_p7, %p798_p6 }
  0x30   :  { %p801_p9 = pnand %p800_p8, %p794_p5 }
  0x32   :  { %804 = shalt.err (!%p801_p9)
}
  0x33   :  { %27 = dma.hbm_to_vmem [thread:$0]  %s1055_s0, 128, %s25_s26, [#allocation3]  }
  0x34   :  { %s884_s27 = smov [#allocation7]   ;;  %s885_s29 = smov [#allocation10]  }
  0x35   :  { %s47_s28 = sshll.u32 %s884_s27, 4  ;;  %s75_s30 = sshll.u32 %s885_s29, 4  ;;  %s48_s28 = int_to_ptr.vmem [resolvable:$true] %s47_s28  ;;  %s76_s30 = int_to_ptr.vmem [resolvable:$true] %s75_s30 }
  0x36   :  { %s805_s13 = scalar_lea.hbm %s1058_s3, 1024 }
  0x37   :  { %p806_p10 = scmp.ne.s32.totalorder %s1058_s3, %s805_s13  ;;  %p809_p11 = scmp.lt.u32.totalorder %s805_s13, %s1058_s3 }
  0x39   :  { %p811_p12 = pnand %p809_p11, %p806_p10 }
  0x3b   :  { %814 = shalt.err (!%p811_p12)
}
  0x3c   :  { %s815_s0 = scalar_lea.vmem %s48_s28, 1024  ;;  %p820_p0 = scmp.lt.s32.totalorder %s48_s28, %s48_s28 }
  0x3d   :  { %p816_p13 = scmp.ne.s32.totalorder %s48_s28, %s815_s0  ;;  %p821_p1 = scmp.lt.s32.totalorder %s815_s0, %s815_s0 }
  0x3f   :  { %p822_p2 = por %p821_p1, %p820_p0 }
  0x41   :  { %p823_p3 = pnand %p822_p2, %p816_p13 }
  0x43   :  { %826 = shalt.err (!%p823_p3)
}
  0x44   :  { %53 = dma.hbm_to_vmem [thread:$0]  %s1058_s3, 1024, %s48_s28, [#allocation6], %s880_s19, %s880_s19, %s881_s20  }
  0x45   :  { %s827_s21 = scalar_lea.hbm %s1062_s7, 2048 }
  0x46   :  { %p828_p4 = scmp.ne.s32.totalorder %s1062_s7, %s827_s21  ;;  %p831_p5 = scmp.lt.u32.totalorder %s827_s21, %s1062_s7 }
  0x48   :  { %p833_p6 = pnand %p831_p5, %p828_p4 }
  0x4a   :  { %836 = shalt.err (!%p833_p6)
}
  0x4b   :  { %s837_s24 = scalar_lea.vmem %s76_s30, 2048  ;;  %p842_p8 = scmp.lt.s32.totalorder %s76_s30, %s76_s30 }
  0x4c   :  { %p838_p7 = scmp.ne.s32.totalorder %s76_s30, %s837_s24  ;;  %p843_p9 = scmp.lt.s32.totalorder %s837_s24, %s837_s24 }
  0x4e   :  { %p844_p10 = por %p843_p9, %p842_p8 }
  0x50   :  { %p845_p11 = pnand %p844_p10, %p838_p7 }
  0x52   :  { %848 = shalt.err (!%p845_p11)
}
  0x53   :  { %s886_s3 = smov 128   ;;  %s887_s19 = smov 8  }
  0x54   :  { %81 = dma.hbm_to_vmem [thread:$0]  %s1062_s7, 2048, %s76_s30, [#allocation9], %s886_s3, %s886_s3, %s887_s19  }
  0x55   :  { %871 = dma.done.wait [#allocation3], 128  }
  0x56   :  { %872 = vsyncadd [#allocation3], 4294967168 }
  0x57   :  { %873 = dma.done.wait [#allocation6], 1152  }
  0x58   :  { %874 = vsyncadd [#allocation6], 4294966144 }
  0x59   :  { %875 = dma.done.wait [#allocation9], 3072  }
  0x5a   :  { %876 = vsyncadd [#allocation9], 4294964224  ;;  %v888_v0 = vmov 0.0   ;;  %vm889_vm0 = vmmov 0   ;;  %v692_v1 = vld [vmem:[#allocation5] sm:$0xff]   ;;  %v100_v2 = vld [vmem:[#allocation2] sm:$0xff]  ;;  %v407_v61 = vlaneseq }
  0x5b   :  { %633 = vmatprep.subr.bf16.mxu0 %v888_v0  ;;  %635 = vmatprep.mubr.msk.bf16.mxu0 %vm889_vm0, %v888_v0  ;;  %v101_v3 = vpack.c.bf16 %v100_v2, %v100_v2  ;;  %vm117_vm1 = vcmask 130048   ;;  %v693_v4 = vld [vmem:[#allocation7] sm:$0xff]   ;;  %v694_v5 = vld [vmem:[#allocation7 + $0x8] sm:$0xff]   ;;  %v695_v6 = vld [vmem:[#allocation7 + $0x10] sm:$0xff]   ;;  %v890_v52 = vmov 0  }
  0x5c   :  { %639 = vmatprep.subr.bf16.mxu1 %v888_v0  ;;  %655 = vmatprep.mubr.msk.bf16.mxu1 %vm889_vm0, %v888_v0  ;;  %v696_v7 = vld [vmem:[#allocation7 + $0x18] sm:$0xff]   ;;  %v697_v8 = vld [vmem:[#allocation7 + $0x20] sm:$0xff]   ;;  %v698_v9 = vld [vmem:[#allocation7 + $0x28] sm:$0xff]   ;;  %v408_v62 = vshrl.u32 %v407_v61, 7 }
  0x5d   :  { %634 = vmatpush3.bf16.msra.mxu0 %v692_v1  ;;  %640 = vmatpush3.bf16.msra.mxu1 %v693_v4  ;;  %v699_v10 = vld [vmem:[#allocation7 + $0x30] sm:$0xff]   ;;  %v700_v11 = vld [vmem:[#allocation7 + $0x38] sm:$0xff]   ;;  %v701_v12 = vld [vmem:[#allocation8] sm:$0xff]  }
  0x5e   :  { %659 = vmatprep.subr.bf16.mxu0 %v888_v0  ;;  %641 = vmatprep.subr.bf16.mxu1 %v888_v0  ;;  %v702_v13 = vld [vmem:[#allocation8 + $0x8] sm:$0xff]   ;;  %v703_v14 = vld [vmem:[#allocation8 + $0x10] sm:$0xff]   ;;  %v704_v15 = vld [vmem:[#allocation8 + $0x18] sm:$0xff]   ;;  %v409_v63 = vsub.s32 0, %v408_v62  ;;  %v413_v1 = vsub.s32 1, %v408_v62 }
  0x5f   :  { %v705_v16 = vld [vmem:[#allocation8 + $0x20] sm:$0xff]   ;;  %v706_v17 = vld [vmem:[#allocation8 + $0x28] sm:$0xff]   ;;  %v576_v18 = vld [vmem:[%s1057_s2] ss:$0 sm:$0xff] }
  0x60   :  { %636 = vmatmul.mubr.msk.bf16.vlgmr.msra.gmra.mrb[0].mxu0 %vm117_vm1, %v101_v3  ;;  %v707_v26 = vld [vmem:[#allocation8 + $0x30] sm:$0xff]   ;;  %v708_v27 = vld [vmem:[#allocation8 + $0x38] sm:$0xff]   ;;  %v709_v28 = vld [vmem:[#allocation10] ss:$8 sps:$4 sm:$0xff]  }
  0x61   :  { %675 = vmatprep.mubr.msk.bf16.mxu0 %vm889_vm0, %v888_v0  ;;  %642 = vmatpush3.bf16.msra.mxu1 %v694_v5  ;;  %v711_v29 = vld [vmem:[#allocation10 + $0x4] ss:$8 sps:$4 sm:$0xff]   ;;  %v714_v30 = vld [vmem:[#allocation10 + $0x14] ss:$8 sps:$4 sm:$0xff]   ;;  %v712_v31 = vld [vmem:[#allocation10 + $0x10] ss:$8 sps:$4 sm:$0xff]  }
  0x62   :  { %643 = vmatprep.subr.bf16.mxu1 %v888_v0  ;;  %660 = vmatpush3.bf16.msra.mxu0 %v701_v12  ;;  %v717_v32 = vld [vmem:[#allocation10 + $0x24] ss:$8 sps:$4 sm:$0xff]   ;;  %v715_v33 = vld [vmem:[#allocation10 + $0x20] ss:$8 sps:$4 sm:$0xff]   ;;  %v720_v34 = vld [vmem:[#allocation10 + $0x34] ss:$8 sps:$4 sm:$0xff]  }
  0x63   :  { %661 = vmatprep.subr.bf16.mxu0 %v888_v0  ;;  %v718_v35 = vld [vmem:[#allocation10 + $0x30] ss:$8 sps:$4 sm:$0xff]   ;;  %v723_v36 = vld [vmem:[#allocation10 + $0x44] ss:$8 sps:$4 sm:$0xff]   ;;  %v721_v37 = vld [vmem:[#allocation10 + $0x40] ss:$8 sps:$4 sm:$0xff]  }
  0x64   :  { %v726_v38 = vld [vmem:[#allocation10 + $0x54] ss:$8 sps:$4 sm:$0xff]   ;;  %v724_v39 = vld [vmem:[#allocation10 + $0x50] ss:$8 sps:$4 sm:$0xff]   ;;  %v729_v40 = vld [vmem:[#allocation10 + $0x64] ss:$8 sps:$4 sm:$0xff]  }
  0x65   :  { %644 = vmatpush3.bf16.msra.mxu1 %v695_v6  ;;  %v727_v41 = vld [vmem:[#allocation10 + $0x60] ss:$8 sps:$4 sm:$0xff]   ;;  %v579_v42 = vld [vmem:[%s1059_s4] ss:$0 sm:$0xff]  ;;  %v732_v50 = vld [vmem:[#allocation10 + $0x74] ss:$8 sps:$4 sm:$0xff]  }
  0x66   :  { %645 = vmatprep.subr.bf16.mxu1 %v888_v0  ;;  %662 = vmatpush3.bf16.msra.mxu0 %v702_v13  ;;  %v730_v51 = vld [vmem:[#allocation10 + $0x70] ss:$8 sps:$4 sm:$0xff]  }
  0x67   :  { %663 = vmatprep.subr.bf16.mxu0 %v888_v0  ;;  %v588_v53 = vld [vmem:[%s1061_s6] ss:$0 sm:$0xff]  ;;  %s891_s6 = smov [#allocation11]  }
  0x69   :  { %646 = vmatpush3.bf16.msra.mxu1 %v696_v7 }
  0x6a   :  { %647 = vmatprep.subr.bf16.mxu1 %v888_v0  ;;  %664 = vmatpush3.bf16.msra.mxu0 %v703_v14 }
  0x6b   :  { %665 = vmatprep.subr.bf16.mxu0 %v888_v0 }
  0x6d   :  { %648 = vmatpush3.bf16.msra.mxu1 %v697_v8 }
  0x6e   :  { %649 = vmatprep.subr.bf16.mxu1 %v888_v0  ;;  %666 = vmatpush3.bf16.msra.mxu0 %v704_v15 }
  0x6f   :  { %667 = vmatprep.subr.bf16.mxu0 %v888_v0 }
  0x71   :  { %650 = vmatpush3.bf16.msra.mxu1 %v698_v9 }
  0x72   :  { %651 = vmatprep.subr.bf16.mxu1 %v888_v0  ;;  %668 = vmatpush3.bf16.msra.mxu0 %v705_v16 }
  0x73   :  { %669 = vmatprep.subr.bf16.mxu0 %v888_v0 }
  0x75   :  { %652 = vmatpush3.bf16.msra.mxu1 %v699_v10 }
  0x76   :  { %653 = vmatprep.subr.bf16.mxu1 %v888_v0  ;;  %670 = vmatpush3.bf16.msra.mxu0 %v706_v17 }
  0x77   :  { %671 = vmatprep.subr.bf16.mxu0 %v888_v0 }
  0x79   :  { %654 = vmatpush3.bf16.msra.mxu1 %v700_v11 }
  0x7a   :  { %672 = vmatpush3.bf16.msra.mxu0 %v707_v26  ;;  %497 = vmatprep.subr.bf16.mxu1 %v711_v29 }
  0x7b   :  { %673 = vmatprep.subr.bf16.mxu0 %v888_v0  ;;  %v405_v0 = vld [vmem:[%s1063_s8] sm:$0x3]  ;;  %s565_s8 = sshll.u32 %s891_s6, 4  ;;  %s566_s8 = int_to_ptr.vmem [resolvable:$true] %s565_s8 }
  0x7c   :  { %v410_v2 = vrot.slane %v405_v0, %v409_v63  ;;  %v414_v3 = vrot.slane %v405_v0, %v413_v1  ;;  %s849_s13 = scalar_lea.vmem %s566_s8, 128  ;;  %p854_p13 = scmp.lt.s32.totalorder %s566_s8, %s566_s8 }
  0x7d   :  { %p850_p12 = scmp.ne.s32.totalorder %s566_s8, %s849_s13  ;;  %p855_p0 = scmp.lt.s32.totalorder %s849_s13, %s849_s13 }
  0x7e   :  { %674 = vmatpush3.bf16.msra.mxu0 %v708_v27 }
  0x7f   :  { %p856_p1 = por %p855_p0, %p854_p13 }
  0x81   :  { %p857_p2 = pnand %p856_p1, %p850_p12 }
 0x133   :  { %v155_v19 = vpop.f32.mrb[0].mxu0 }
 0x134   :  { %v156_v20 = vadd.f32 %v576_v18, %v155_v19  ;;  %v637_v21 = vpop.f32.mrb[1].mxu0 }
 0x135   :  { %v158_v22 = vpop.f32.mrb[2].mxu0 }
 0x136   :  { %v161_v23 = vmax.f32 %v156_v20, 0.0  ;;  %v638_v24 = vpop.f32.mrb[3].mxu0 }
 0x138   :  { %v162_v25 = vpack.c.bf16 %v161_v23, %v161_v23 }
 0x13a   :  { %656 = vmatmul.mubr.bf16.vlgmr.msra.gmra.mrb[0].mxu1 %v162_v25 }
 0x13b   :  { %498 = vmatpush1.bf16.msra.mxu1 %v709_v28  ;;  %529 = vmatprep.mubr.bf16.mxu1 %v890_v52 }
 0x13c   :  { %499 = vmatprep.subr.bf16.mxu1 %v714_v30 }
 0x13f   :  { %500 = vmatpush1.bf16.msra.mxu1 %v712_v31 }
 0x140   :  { %501 = vmatprep.subr.bf16.mxu1 %v717_v32 }
 0x143   :  { %502 = vmatpush1.bf16.msra.mxu1 %v715_v33 }
 0x144   :  { %503 = vmatprep.subr.bf16.mxu1 %v720_v34 }
 0x147   :  { %504 = vmatpush1.bf16.msra.mxu1 %v718_v35 }
 0x148   :  { %505 = vmatprep.subr.bf16.mxu1 %v723_v36 }
 0x14b   :  { %506 = vmatpush1.bf16.msra.mxu1 %v721_v37 }
 0x14c   :  { %507 = vmatprep.subr.bf16.mxu1 %v726_v38 }
 0x14f   :  { %508 = vmatpush1.bf16.msra.mxu1 %v724_v39 }
 0x150   :  { %509 = vmatprep.subr.bf16.mxu1 %v729_v40 }
 0x153   :  { %510 = vmatpush1.bf16.msra.mxu1 %v727_v41 }
 0x154   :  { %511 = vmatprep.subr.bf16.mxu1 %v732_v50 }
 0x157   :  { %512 = vmatpush1.bf16.msra.mxu1 %v730_v51 }
 0x20d   :  { %v268_v43 = vpop.f32.mrb[0].mxu1 }
 0x20e   :  { %v269_v44 = vadd.f32 %v579_v42, %v268_v43  ;;  %v657_v45 = vpop.f32.mrb[1].mxu1 }
 0x20f   :  { %v271_v46 = vpop.f32.mrb[2].mxu1 }
 0x210   :  { %v274_v47 = vmax.f32 %v269_v44, 0.0  ;;  %v658_v48 = vpop.f32.mrb[3].mxu1 }
 0x212   :  { %v275_v49 = vpack.c.bf16 %v274_v47, %v274_v47 }
 0x214   :  { %676 = vmatmul.mubr.bf16.vlgmr.msra.gmra.mrb[4].mxu0 %v275_v49 }
 0x2e7   :  { %v381_v54 = vpop.f32.mrb[4].mxu0 }
 0x2e8   :  { %v382_v55 = vadd.f32 %v588_v53, %v381_v54  ;;  %v677_v56 = vpop.f32.mrb[5].mxu0 }
 0x2e9   :  { %v384_v57 = vpop.f32.mrb[6].mxu0 }
 0x2ea   :  { %v387_v58 = vmax.f32 %v382_v55, 0.0  ;;  %v678_v59 = vpop.f32.mrb[7].mxu0 }
 0x2ec   :  { %v388_v60 = vpack.c.bf16 %v387_v58, %v387_v58 }
 0x2ee   :  { %530 = vmatmul.mubr.bf16.vlgmr.msra.gmra.mrb[4].mxu1 %v388_v60 }
 0x3c1   :  { %v531_v4 = vpop.f32.mrb[4].mxu1 }
 0x3c2   :  { %v532_v5 = vadd.f32 %v531_v4, %v410_v2  ;;  %v533_v6 = vpop.f32.mrb[5].mxu1 }
 0x3c3   :  { %v534_v7 = vadd.f32 %v533_v6, %v414_v3  ;;  %v535_v8 = vpop.f32.mrb[6].mxu1 }
 0x3c4   :  { %733 = vtanh.f32 %v532_v5  ;;  %v536_v9 = vpop.f32.mrb[7].mxu1 }
 0x3c5   :  { %v542_v10 = vand.u32 2147483647, %v534_v7  ;;  %v541_v23 = vmax.f32 %v534_v7, 0.0 }
 0x3c7   :  { %v543_v11 = vsub.f32 0.0, %v542_v10 }
 0x3c9   :  { %v544_v12 = vmul.f32 1.442695, %v543_v11 }
 0x3cb   :  { %735 = vpow2.f32 %v544_v12 }
 0x3ce   :  { %v734_v13 = vpop.eup %733 }
 0x3cf   :  { %v539_v14 = vpack.c.bf16 %v734_v13, %v734_v13 }
 0x3d1   :  { %540 = vst [vmem:[#allocation11] sm:$0xf] %v539_v14 }
 0x3d5   :  { %v736_v15 = vpop.eup %735 }
 0x3d6   :  { %v546_v16 = vadd.f32 1.0, %v736_v15  ;;  %v549_v17 = vmul.f32 -0.5, %v736_v15  ;;  %v552_v19 = vand.u32 2147483647, %v736_v15 }
 0x3d8   :  { %737 = vlog2.f32 %v546_v16  ;;  %v550_v18 = vadd.f32 1.0, %v549_v17  ;;  %vm553_vm2 = vcmp.lt.f32.partialorder %v552_v19, 0.0004427343 }
 0x3da   :  { %v551_v22 = vmul.f32 %v736_v15, %v550_v18 }
 0x3e2   :  { %v738_v20 = vpop.eup %737 }
 0x3e3   :  { %v548_v21 = vmul.f32 0.6931472, %v738_v20 }
 0x3e5   :  { %v554_v24 = vsel %vm553_vm2, %v551_v22, %v548_v21 }
 0x3e6   :  { %v555_v25 = vadd.f32 %v554_v24, %v541_v23 }
 0x3e8   :  { %v556_v26 = vadd.f32 1e-08, %v555_v25 }
 0x3ea   :  { %v557_v27 = vpack.c.bf16 %v556_v26, %v556_v26 }
 0x3ec   :  { %558 = vst [vmem:[#allocation11 + $0x4] sm:$0xf] %v557_v27 }
 0x3ed   :  { %860 = shalt.err (!%p857_p2)
}
 0x3ee   :  { %s861_s14 = scalar_lea.hbm %s1064_s9, 128 }
 0x3ef   :  { %p862_p3 = scmp.ne.s32.totalorder %s1064_s9, %s861_s14  ;;  %p865_p4 = scmp.lt.u32.totalorder %s861_s14, %s1064_s9 }
 0x3f1   :  { %p867_p5 = pnand %p865_p4, %p862_p3 }
 0x3f3   :  { %870 = shalt.err (!%p867_p5)
}
 0x3f4   :  { %568 = dma.vmem_to_hbm [thread:$0]  %s566_s8, 128, %s1064_s9, [#allocation4]  }
 0x3f5   :  { %877 = dma.done.wait [#allocation4], 128  }
 0x3f6   :  { %878 = vsyncadd [#allocation4], 4294967168 }
 0x3f7   :  { %572 = vsyncpa [#allocation3], 1 }
 0x3f8   :  { %573 = vsyncpa [#allocation6], 1 }
 0x3f9   :  { %574 = vsyncpa [#allocation9], 1 }
 0x3fa   :  { %575 = vsyncpa [#allocation4], 1 }

</bundles_post_ra>
